<compile_context>
chip_gen: v5e
topology: v5e:2x2
jax: 0.10.0
libtpu: 0.0.40
codegen_flags: <defaults>
</compile_context>

<pallas_src>
import functools

import jax
import jax.numpy as jnp
from jax import lax
from jax.experimental import pallas as pl
from jax.experimental.pallas import tpu as pltpu


def _round_up(x, m):
    return (x + m - 1) // m * m


def _rbm_kernel(k, v_ref, w_ref, hb_ref, vb_ref, uh_ref, uv_ref, vg_ref, h_ref):
    """Fused RBM Gibbs chain.

    v_ref  : VMEM (B, n_vis)        f32   visible input
    w_ref  : VMEM (n_hid, n_vis)    bf16  (or f32) weights
    hb_ref : VMEM (1, n_hid)        f32   hidden bias
    vb_ref : VMEM (1, n_vis)        f32   visible bias
    uh_ref : VMEM (k+1, B, n_hid)   f32   uniforms for hidden sampling
    uv_ref : VMEM (k,   B, n_vis)   f32   uniforms for visible sampling
    vg_ref : VMEM (B, n_vis)        f32   out: Bernoulli sample of visible
    h_ref  : VMEM (B, n_hid)        f32   out: Bernoulli sample of hidden
    """
    W = w_ref[...]
    hb = hb_ref[...]
    vb = vb_ref[...]
    w_dtype = W.dtype

    def v_to_h(vis, u):
        # F.linear(v, W, h_bias) = v @ W.T + h_bias -> (B, n_hid)
        # Contraction over W's lane dim == trans_b matmul; the MXU streams W
        # transposed, no materialized relayout of the big W.
        logits = lax.dot_general(
            vis.astype(w_dtype), W, (((1,), (1,)), ((), ())),
            preferred_element_type=jnp.float32) + hb
        p = jax.nn.sigmoid(logits)
        return (u < p).astype(jnp.float32)

    def h_to_v(hid, u):
        # F.linear(h, W.t(), v_bias) = h @ W + v_bias -> (B, n_vis)
        logits = lax.dot_general(
            hid.astype(w_dtype), W, (((1,), (0,)), ((), ())),
            preferred_element_type=jnp.float32) + vb
        p = jax.nn.sigmoid(logits)
        return (u < p).astype(jnp.float32)

    h = v_to_h(v_ref[...], uh_ref[0])

    if k <= 4:
        # Short chains: unroll for LLO scheduler visibility.
        v_gibb = v_ref[...]
        for step in range(k):
            v_gibb = h_to_v(h, uv_ref[step])
            h = v_to_h(v_gibb, uh_ref[step + 1])
    else:
        # Long chains: rolled loop to bound code size / live ranges.
        def body(step, carry):
            _, h_c = carry
            v_g = h_to_v(h_c, uv_ref[step])
            h_c = v_to_h(v_g, uh_ref[step + 1])
            return v_g, h_c

        v_gibb, h = lax.fori_loop(0, k, body, (v_ref[...], h))

    vg_ref[...] = v_gibb
    h_ref[...] = h


def rbm_forward(v, W, v_bias, h_bias, key, k=1, use_bf16_weights=True):
    """Matches RBM.forward(v) -> (v, v_gibb, h)."""
    assert k >= 1, "RBM.forward requires k >= 1 (v_gibb undefined otherwise)"
    B, n_vis = v.shape
    n_hid = W.shape[0]

    # Pad feature dims to multiples of 128: lane-dense stores + legal tiling.
    n_vis_p = _round_up(n_vis, 128)
    n_hid_p = _round_up(n_hid, 128)

    v_p = jnp.pad(v.astype(jnp.float32), ((0, 0), (0, n_vis_p - n_vis)))
    W_p = jnp.pad(W.astype(jnp.float32),
                  ((0, n_hid_p - n_hid), (0, n_vis_p - n_vis)))
    vb_p = jnp.pad(v_bias.astype(jnp.float32), ((0, 0), (0, n_vis_p - n_vis)))
    hb_p = jnp.pad(h_bias.astype(jnp.float32), ((0, 0), (0, n_hid_p - n_hid)))

    w_dtype = jnp.bfloat16 if use_bf16_weights else jnp.float32
    W_p = W_p.astype(w_dtype)

    # Host-side uniforms for the 2k+1 Bernoulli draws of the chain.
    k_h, k_v = jax.random.split(key)
    u_h = jax.random.uniform(k_h, (k + 1, B, n_hid_p), dtype=jnp.float32)
    u_v = jax.random.uniform(k_v, (k, B, n_vis_p), dtype=jnp.float32)

    vmem = pltpu.MemorySpace.VMEM

    # Keep the whole (bf16) W resident in VMEM across the chain; raise the
    # scoped VMEM limit (defaults: 16 MiB v5e, 32 MiB v6e/v7x) with headroom,
    # capped at 64 MiB (v7x physical VMEM per TensorCore).
    est_bytes = (
        W_p.size * W_p.dtype.itemsize
        + (v_p.size + u_h.size + u_v.size) * 4
        + 4 * B * (n_vis_p + n_hid_p) * 4
        + (4 << 20))
    vmem_limit = int(min(max(2 * est_bytes, 32 * 1024 * 1024), 64 * 1024 * 1024))

    v_gibb_p, h_p = pl.pallas_call(
        functools.partial(_rbm_kernel, k),
        out_shape=(
            jax.ShapeDtypeStruct((B, n_vis_p), jnp.float32),
            jax.ShapeDtypeStruct((B, n_hid_p), jnp.float32),
        ),
        in_specs=[
            pl.BlockSpec(memory_space=vmem),   # v
            pl.BlockSpec(memory_space=vmem),   # W (bf16)
            pl.BlockSpec(memory_space=vmem),   # h_bias
            pl.BlockSpec(memory_space=vmem),   # v_bias
            pl.BlockSpec(memory_space=vmem),   # u_h
            pl.BlockSpec(memory_space=vmem),   # u_v
        ],
        out_specs=(
            pl.BlockSpec(memory_space=vmem),
            pl.BlockSpec(memory_space=vmem),
        ),
        compiler_params=pltpu.CompilerParams(vmem_limit_bytes=vmem_limit),
    )(v_p, W_p, hb_p, vb_p, u_h, u_v)

    return v, v_gibb_p[:, :n_vis], h_p[:, :n_hid]


if __name__ == "__main__":
    # Small shapes consistent with the module (defaults are n_vis=22500,
    # n_hid=1000, k=1).  n_vis deliberately non-128-aligned to exercise the
    # padding path.
    B, N_VIS, N_HID, K = 8, 500, 256, 1

    key = jax.random.PRNGKey(0)
    k_w, k_vb, k_hb, k_x, k_noise = jax.random.split(key, 5)

    # Deterministic synthetic parameters (shapes from RBM.__init__).
    W = jax.random.normal(k_w, (N_HID, N_VIS), dtype=jnp.float32)
    v_bias = jax.random.normal(k_vb, (1, N_VIS), dtype=jnp.float32)
    h_bias = jax.random.normal(k_hb, (1, N_HID), dtype=jnp.float32)

    # Visible input batch.
    v = jax.random.uniform(k_x, (B, N_VIS), dtype=jnp.float32)

    v_out, v_gibb, h = rbm_forward(v, W, v_bias, h_bias, k_noise, k=K)
    jax.block_until_ready((v_out, v_gibb, h))

    assert v_out.shape == (B, N_VIS)
    assert v_gibb.shape == (B, N_VIS)
    assert h.shape == (B, N_HID)
    # Bernoulli samples are exactly {0, 1}.
    assert bool(jnp.all((v_gibb == 0) | (v_gibb == 1)))
    assert bool(jnp.all((h == 0) | (h == 1)))
    # Input is returned untouched.
    assert bool(jnp.all(v_out == v))

    print("KERNEL_OK")
</pallas_src>

<mosaic_0001>
module attributes {stable_mosaic.version = 11 : i64} {
  func.func @_rbm_kernel(%arg0: memref<8x512xf32, #tpu.memory_space<vmem>>, %arg1: memref<256x512xbf16, #tpu.memory_space<vmem>>, %arg2: memref<1x256xf32, #tpu.memory_space<vmem>>, %arg3: memref<1x512xf32, #tpu.memory_space<vmem>>, %arg4: memref<2x8x256xf32, #tpu.memory_space<vmem>>, %arg5: memref<1x8x512xf32, #tpu.memory_space<vmem>>, %arg6: memref<8x512xf32, #tpu.memory_space<vmem>>, %arg7: memref<8x256xf32, #tpu.memory_space<vmem>>) attributes {dimension_semantics = [], scalar_prefetch = 0 : i64, scratch_operands = 0 : i64, tpu.core_type = #tpu.core_type<tc>} {
    %c0 = arith.constant 0 : index
    %c0_0 = arith.constant 0 : index
    %0 = vector.load %arg1[%c0, %c0_0] : memref<256x512xbf16, #tpu.memory_space<vmem>>, vector<256x512xbf16>
    %c0_1 = arith.constant 0 : index
    %c0_2 = arith.constant 0 : index
    %1 = vector.load %arg2[%c0_1, %c0_2] : memref<1x256xf32, #tpu.memory_space<vmem>>, vector<1x256xf32>
    %c0_3 = arith.constant 0 : index
    %c0_4 = arith.constant 0 : index
    %2 = vector.load %arg3[%c0_3, %c0_4] : memref<1x512xf32, #tpu.memory_space<vmem>>, vector<1x512xf32>
    %c0_5 = arith.constant 0 : index
    %c0_6 = arith.constant 0 : index
    %3 = vector.load %arg0[%c0_5, %c0_6] : memref<8x512xf32, #tpu.memory_space<vmem>>, vector<8x512xf32>
    %c0_7 = arith.constant 0 : index
    %c0_8 = arith.constant 0 : index
    %c0_9 = arith.constant 0 : index
    %4 = vector.load %arg4[%c0_7, %c0_8, %c0_9] : memref<2x8x256xf32, #tpu.memory_space<vmem>>, vector<1x8x256xf32>
    %5 = vector.shape_cast %4 : vector<1x8x256xf32> to vector<8x256xf32>
    %6 = arith.truncf %3 : vector<8x512xf32> to vector<8x512xbf16>
    %cst = arith.constant dense<0.000000e+00> : vector<8x256xf32>
    %7 = tpu.matmul %6, %0, %cst {dimension_numbers = #tpu.dot_dimension_numbers<[1], [1], [0], [0], [0, 0, 1, 0], [], []>} : vector<8x512xbf16>, vector<256x512xbf16>, vector<8x256xf32> -> vector<8x256xf32>
    %8 = vector.broadcast %1 : vector<1x256xf32> to vector<8x256xf32>
    %9 = arith.addf %7, %8 : vector<8x256xf32>
    %10 = arith.negf %9 : vector<8x256xf32>
    %11 = math.exp %10 : vector<8x256xf32>
    %cst_10 = arith.constant 1.000000e+00 : f32
    %12 = vector.broadcast %cst_10 : f32 to vector<8x256xf32>
    %13 = arith.addf %12, %11 : vector<8x256xf32>
    %14 = arith.divf %12, %13 : vector<8x256xf32>
    %15 = arith.cmpf olt, %5, %14 : vector<8x256xf32>
    %16 = arith.extui %15 : vector<8x256xi1> to vector<8x256xi32>
    %17 = arith.sitofp %16 : vector<8x256xi32> to vector<8x256xf32>
    %c0_11 = arith.constant 0 : index
    %c0_12 = arith.constant 0 : index
    %c0_13 = arith.constant 0 : index
    %18 = vector.load %arg5[%c0_11, %c0_12, %c0_13] : memref<1x8x512xf32, #tpu.memory_space<vmem>>, vector<1x8x512xf32>
    %19 = vector.shape_cast %18 : vector<1x8x512xf32> to vector<8x512xf32>
    %20 = arith.truncf %17 : vector<8x256xf32> to vector<8x256xbf16>
    %cst_14 = arith.constant dense<0.000000e+00> : vector<8x512xf32>
    %21 = tpu.matmul %20, %0, %cst_14 {dimension_numbers = #tpu.dot_dimension_numbers<[1], [0], [0], [1], [0, 0, 1, 1], [], []>} : vector<8x256xbf16>, vector<256x512xbf16>, vector<8x512xf32> -> vector<8x512xf32>
    %22 = vector.broadcast %2 : vector<1x512xf32> to vector<8x512xf32>
    %23 = arith.addf %21, %22 : vector<8x512xf32>
    %24 = arith.negf %23 : vector<8x512xf32>
    %25 = math.exp %24 : vector<8x512xf32>
    %cst_15 = arith.constant 1.000000e+00 : f32
    %26 = vector.broadcast %cst_15 : f32 to vector<8x512xf32>
    %27 = arith.addf %26, %25 : vector<8x512xf32>
    %28 = arith.divf %26, %27 : vector<8x512xf32>
    %29 = arith.cmpf olt, %19, %28 : vector<8x512xf32>
    %30 = arith.extui %29 : vector<8x512xi1> to vector<8x512xi32>
    %31 = arith.sitofp %30 : vector<8x512xi32> to vector<8x512xf32>
    %c1 = arith.constant 1 : index
    %c0_16 = arith.constant 0 : index
    %c0_17 = arith.constant 0 : index
    %32 = vector.load %arg4[%c1, %c0_16, %c0_17] : memref<2x8x256xf32, #tpu.memory_space<vmem>>, vector<1x8x256xf32>
    %33 = vector.shape_cast %32 : vector<1x8x256xf32> to vector<8x256xf32>
    %34 = arith.truncf %31 : vector<8x512xf32> to vector<8x512xbf16>
    %cst_18 = arith.constant dense<0.000000e+00> : vector<8x256xf32>
    %35 = tpu.matmul %34, %0, %cst_18 {dimension_numbers = #tpu.dot_dimension_numbers<[1], [1], [0], [0], [0, 0, 1, 0], [], []>} : vector<8x512xbf16>, vector<256x512xbf16>, vector<8x256xf32> -> vector<8x256xf32>
    %36 = vector.broadcast %1 : vector<1x256xf32> to vector<8x256xf32>
    %37 = arith.addf %35, %36 : vector<8x256xf32>
    %38 = arith.negf %37 : vector<8x256xf32>
    %39 = math.exp %38 : vector<8x256xf32>
    %cst_19 = arith.constant 1.000000e+00 : f32
    %40 = vector.broadcast %cst_19 : f32 to vector<8x256xf32>
    %41 = arith.addf %40, %39 : vector<8x256xf32>
    %42 = arith.divf %40, %41 : vector<8x256xf32>
    %43 = arith.cmpf olt, %33, %42 : vector<8x256xf32>
    %44 = arith.extui %43 : vector<8x256xi1> to vector<8x256xi32>
    %45 = arith.sitofp %44 : vector<8x256xi32> to vector<8x256xf32>
    %c0_20 = arith.constant 0 : index
    %c0_21 = arith.constant 0 : index
    %46 = vector.load %arg6[%c0_20, %c0_21] : memref<8x512xf32, #tpu.memory_space<vmem>>, vector<8x512xf32>
    tpu.vector_store %arg6[%c0_20, %c0_21], %31 {strides = array<i32>} : memref<8x512xf32, #tpu.memory_space<vmem>>, vector<8x512xf32>,
    %c0_22 = arith.constant 0 : index
    %c0_23 = arith.constant 0 : index
    %47 = vector.load %arg7[%c0_22, %c0_23] : memref<8x256xf32, #tpu.memory_space<vmem>>, vector<8x256xf32>
    tpu.vector_store %arg7[%c0_22, %c0_23], %45 {strides = array<i32>} : memref<8x256xf32, #tpu.memory_space<vmem>>, vector<8x256xf32>,
    return
  }
}

</mosaic_0001>

<bundles_post_ra>
// kernel: tpu_custom_call.1
= control target key start
LH: loop header
LB: loop body
LE: loop exit
PB: predicated region body
PF: predicated region fallthrough
CT: control target
= control target key end

     0   :  { %13 = vsyncpa [#allocation3], 0  ;;  %s2158_s0 = inlined_call_operand.hbm [shape: f32[8,512], index: 0, kind: input, shape index: {}]   ;;  %s2159_s1 = inlined_call_operand.hbm [shape: bf16[256,512], index: 1, kind: input, shape index: {}]   ;;  %s2160_s2 = inlined_call_operand.hbm [shape: f32[1,256], index: 2, kind: input, shape index: {}]   ;;  %s2161_s3 = inlined_call_operand.hbm [shape: f32[1,512], index: 3, kind: input, shape index: {}]   ;;  %s2162_s4 = inlined_call_operand.hbm [shape: f32[2,8,256], index: 4, kind: input, shape index: {}]   ;;  %s2163_s5 = inlined_call_operand.hbm [shape: f32[1,8,512], index: 5, kind: input, shape index: {}]   ;;  %s2164_s6 = inlined_call_operand.hbm [shape: f32[8,512], index: 6, kind: output, shape index: {0}]   ;;  %s2165_s7 = inlined_call_operand.hbm [shape: f32[8,256], index: 7, kind: output, shape index: {1}]  }
   0x1   :  { %14 = vsyncpa [#allocation6], 0 }
   0x2   :  { %15 = vsyncpa [#allocation9], 0 }
   0x3   :  { %16 = vsyncpa [#allocation12], 0 }
   0x4   :  { %17 = vsyncpa [#allocation4], 0  ;;  %s34_s26 = sshll.u32 %s2159_s1, 4  ;;  %s35_s26 = int_to_ptr.hbm [resolvable:$true] %s34_s26 }
   0x5   :  { %18 = vsyncpa [#allocation15], 0  ;;  %s1682_s27 = smov [#allocation5]   ;;  %s59_s8 = sshll.u32 %s2161_s3, 4  ;;  %s60_s8 = int_to_ptr.hbm [resolvable:$true] %s59_s8 }
   0x6   :  { %s36_s28 = sshll.u32 %s1682_s27, 4  ;;  %s1683_s9 = smov 256   ;;  %s37_s28 = int_to_ptr.vmem [resolvable:$true] %s36_s28 }
   0x7   :  { %s1684_s10 = smov 16   ;;  %s1685_s11 = smov [#allocation8]  }
   0x8   :  { %42 = dma.hbm_to_vmem [thread:$0]  %s35_s26, 8192, %s37_s28, [#allocation6], %s1683_s9, %s1683_s9, %s1684_s10  }
   0x9   :  { %s61_s12 = sshll.u32 %s1685_s11, 4  ;;  %s24_s14 = sshll.u32 %s2158_s0, 4  ;;  %s62_s12 = int_to_ptr.vmem [resolvable:$true] %s61_s12  ;;  %s25_s14 = int_to_ptr.hbm [resolvable:$true] %s24_s14 }
   0xa   :  { %64 = dma.hbm_to_vmem [thread:$0]  %s60_s8, 64, %s62_s12, [#allocation9]  }
   0xb   :  { %s48_s3 = sshll.u32 %s2160_s2, 4  ;;  %s1686_s17 = smov [#allocation2]   ;;  %s49_s3 = int_to_ptr.hbm [resolvable:$true] %s48_s3 }
   0xc   :  { %s26_s18 = sshll.u32 %s1686_s17, 4  ;;  %s1687_s19 = smov [#allocation7]   ;;  %s27_s18 = int_to_ptr.vmem [resolvable:$true] %s26_s18 }
   0xd   :  { %29 = dma.hbm_to_vmem [thread:$0]  %s25_s14, 512, %s27_s18, [#allocation3]  }
   0xe   :  { %s50_s20 = sshll.u32 %s1687_s19, 4  ;;  %s69_s23 = sshll.u32 %s2162_s4, 4  ;;  %s51_s20 = int_to_ptr.vmem [resolvable:$true] %s50_s20  ;;  %s70_s23 = int_to_ptr.hbm [resolvable:$true] %s69_s23 }
   0xf   :  { %53 = dma.hbm_to_vmem [thread:$0]  %s49_s3, 32, %s51_s20, [#allocation6]  }
  0x10   :  { %s83_s25 = sshll.u32 %s2163_s5, 4  ;;  %s1688_s26 = smov [#allocation10]   ;;  %s84_s25 = int_to_ptr.hbm [resolvable:$true] %s83_s25 }
  0x11   :  { %s71_s2 = sshll.u32 %s1688_s26, 4  ;;  %s1689_s27 = smov [#allocation11]   ;;  %s72_s2 = int_to_ptr.vmem [resolvable:$true] %s71_s2 }
  0x12   :  { %77 = dma.hbm_to_vmem [thread:$0]  %s70_s23, 512, %s72_s2, [#allocation9], %s1683_s9, %s1683_s9, %s1684_s10  }
  0x13   :  { %s85_s28 = sshll.u32 %s1689_s27, 4  ;;  %s86_s28 = int_to_ptr.vmem [resolvable:$true] %s85_s28 }
  0x14   :  { %88 = dma.hbm_to_vmem [thread:$0]  %s84_s25, 512, %s86_s28, [#allocation12]  }
  0x15   :  { %1670 = dma.done.wait [#allocation3], 512  }
  0x16   :  { %1671 = vsyncadd [#allocation3], 4294966784 }
  0x17   :  { %1672 = dma.done.wait [#allocation6], 8224  }
  0x18   :  { %1673 = vsyncadd [#allocation6], 4294959072 }
  0x19   :  { %1674 = dma.done.wait [#allocation9], 576  }
  0x1a   :  { %1675 = vsyncadd [#allocation9], 4294966720 }
  0x1b   :  { %1676 = dma.done.wait [#allocation12], 512  }
  0x1c   :  { %1677 = vsyncadd [#allocation12], 4294966784  ;;  %v1180_v0 = vld [vmem:[#allocation5 + $0xe0] sm:$0xf]  ;;  %v1400_v1 = vld [vmem:[#allocation5 + $0xec] sm:$0xf0] }
  0x1d   :  { %v1398_v2 = vld [vmem:[#allocation5 + $0xe4] sm:$0xf]  ;;  %v1758_v3 = vor.u32 %v1400_v1, %v1180_v0  ;;  %v1182_v4 = vld [vmem:[#allocation5 + $0xf0] sm:$0xf0]  ;;  %v1188_v5 = vld [vmem:[#allocation5 + $0xe8] sm:$0xf] }
  0x1e   :  { %v1401_v6 = vld [vmem:[#allocation5 + $0xf4] sm:$0xf0]  ;;  %v1760_v7 = vor.u32 %v1398_v2, %v1182_v4  ;;  %v1399_v9 = vld [vmem:[#allocation5 + $0xec] sm:$0xf]  ;;  %v1190_v10 = vld [vmem:[#allocation5 + $0xf8] sm:$0xf0] }
  0x1f   :  { %v1762_v8 = vor.u32 %v1401_v6, %v1188_v5  ;;  %514 = vmatpush.bf16.xpose.msra.mxu0 %v1758_v3  ;;  %v1765_v11 = vor.u32 %v1399_v9, %v1190_v10  ;;  %v1164_v12 = vld [vmem:[#allocation5 + $0xc0] sm:$0xf]  ;;  %v1396_v13 = vld [vmem:[#allocation5 + $0xcc] sm:$0xf0]  ;;  %v1394_v14 = vld [vmem:[#allocation5 + $0xc4] sm:$0xf] }
  0x20   :  { %527 = vmatpush.bf16.xpose.msra.mxu1 %v1760_v7  ;;  %v1166_v15 = vld [vmem:[#allocation5 + $0xd0] sm:$0xf0]  ;;  %v1172_v16 = vld [vmem:[#allocation5 + $0xc8] sm:$0xf]  ;;  %v1397_v17 = vld [vmem:[#allocation5 + $0xd4] sm:$0xf0]  ;;  %v1770_v20 = vor.u32 %v1396_v13, %v1164_v12 }
  0x21   :  { %540 = vmatpush.bf16.xpose.msra.mxu2 %v1762_v8  ;;  %553 = vmatpush.bf16.xpose.msra.mxu3 %v1765_v11  ;;  %v1395_v18 = vld [vmem:[#allocation5 + $0xcc] sm:$0xf]  ;;  %v1174_v19 = vld [vmem:[#allocation5 + $0xd8] sm:$0xf0]  ;;  %v1772_v21 = vor.u32 %v1394_v14, %v1166_v15  ;;  %v1774_v22 = vor.u32 %v1397_v17, %v1172_v16  ;;  %v1148_v24 = vld [vmem:[#allocation5 + $0xa0] sm:$0xf] }
  0x22   :  { %v1776_v23 = vor.u32 %v1395_v18, %v1174_v19  ;;  %v1392_v25 = vld [vmem:[#allocation5 + $0xac] sm:$0xf0]  ;;  %v1390_v26 = vld [vmem:[#allocation5 + $0xa4] sm:$0xf]  ;;  %v1150_v27 = vld [vmem:[#allocation5 + $0xb0] sm:$0xf0] }
  0x23   :  { %v1156_v28 = vld [vmem:[#allocation5 + $0xa8] sm:$0xf]  ;;  %v1393_v29 = vld [vmem:[#allocation5 + $0xb4] sm:$0xf0]  ;;  %v1391_v30 = vld [vmem:[#allocation5 + $0xac] sm:$0xf]  ;;  %v1782_v32 = vor.u32 %v1392_v25, %v1148_v24  ;;  %v1784_v33 = vor.u32 %v1390_v26, %v1150_v27 }
  0x24   :  { %v1158_v31 = vld [vmem:[#allocation5 + $0xb8] sm:$0xf0]  ;;  %v1786_v34 = vor.u32 %v1393_v29, %v1156_v28  ;;  %v1132_v36 = vld [vmem:[#allocation5 + $0x80] sm:$0xf]  ;;  %v1388_v37 = vld [vmem:[#allocation5 + $0x8c] sm:$0xf0] }
  0x25   :  { %v1788_v35 = vor.u32 %v1391_v30, %v1158_v31  ;;  %v1386_v38 = vld [vmem:[#allocation5 + $0x84] sm:$0xf]  ;;  %v1134_v39 = vld [vmem:[#allocation5 + $0x90] sm:$0xf0]  ;;  %v1140_v40 = vld [vmem:[#allocation5 + $0x88] sm:$0xf]  ;;  %v1794_v44 = vor.u32 %v1388_v37, %v1132_v36 }
  0x26   :  { %v1389_v41 = vld [vmem:[#allocation5 + $0x94] sm:$0xf0]  ;;  %v1387_v42 = vld [vmem:[#allocation5 + $0x8c] sm:$0xf]  ;;  %v1142_v43 = vld [vmem:[#allocation5 + $0x98] sm:$0xf0]  ;;  %v1796_v45 = vor.u32 %v1386_v38, %v1134_v39 }
  0x27   :  { %515 = vmatpush.bf16.xpose.msra.mxu0 %v1770_v20  ;;  %v1798_v46 = vor.u32 %v1389_v41, %v1140_v40  ;;  %v1800_v47 = vor.u32 %v1387_v42, %v1142_v43  ;;  %v1116_v48 = vld [vmem:[#allocation5 + $0x60] sm:$0xf]  ;;  %v1384_v49 = vld [vmem:[#allocation5 + $0x6c] sm:$0xf0]  ;;  %v1382_v50 = vld [vmem:[#allocation5 + $0x64] sm:$0xf] }
  0x28   :  { %528 = vmatpush.bf16.xpose.msra.mxu1 %v1772_v21  ;;  %v1118_v51 = vld [vmem:[#allocation5 + $0x70] sm:$0xf0]  ;;  %v1124_v52 = vld [vmem:[#allocation5 + $0x68] sm:$0xf]  ;;  %v1385_v53 = vld [vmem:[#allocation5 + $0x74] sm:$0xf0]  ;;  %v1806_v56 = vor.u32 %v1384_v49, %v1116_v48 }
  0x29   :  { %541 = vmatpush.bf16.xpose.msra.mxu2 %v1774_v22  ;;  %554 = vmatpush.bf16.xpose.msra.mxu3 %v1776_v23  ;;  %v1383_v54 = vld [vmem:[#allocation5 + $0x6c] sm:$0xf]  ;;  %v1126_v55 = vld [vmem:[#allocation5 + $0x78] sm:$0xf0]  ;;  %v1808_v57 = vor.u32 %v1382_v50, %v1118_v51  ;;  %v1810_v58 = vor.u32 %v1385_v53, %v1124_v52  ;;  %v1100_v60 = vld [vmem:[#allocation5 + $0x40] sm:$0xf] }
  0x2a   :  { %v1812_v59 = vor.u32 %v1383_v54, %v1126_v55  ;;  %v1380_v61 = vld [vmem:[#allocation5 + $0x4c] sm:$0xf0]  ;;  %v1378_v62 = vld [vmem:[#allocation5 + $0x44] sm:$0xf]  ;;  %v1102_v63 = vld [vmem:[#allocation5 + $0x50] sm:$0xf0] }
  0x2b   :  { %v1108_v0 = vld [vmem:[#allocation5 + $0x48] sm:$0xf]  ;;  %v1381_v1 = vld [vmem:[#allocation5 + $0x54] sm:$0xf0]  ;;  %v1379_v2 = vld [vmem:[#allocation5 + $0x4c] sm:$0xf]  ;;  %v1818_v5 = vor.u32 %v1380_v61, %v1100_v60  ;;  %v1820_v6 = vor.u32 %v1378_v62, %v1102_v63 }
  0x2c   :  { %2207 = vst [vmem:[#allocation22_spill] sm:$0xff] %v1812_v59  ;;  %v1110_v4 = vld [vmem:[#allocation5 + $0x58] sm:$0xf0]  ;;  %v1822_v9 = vor.u32 %v1381_v1, %v1108_v0  ;;  %v1084_v12 = vld [vmem:[#allocation5 + $0x20] sm:$0xf]  ;;  %v181_v1 = vld [vmem:[#allocation2 + $0x10] sm:$0xff] }
  0x2d   :  { %v1824_v10 = vor.u32 %v1379_v2, %v1110_v4  ;;  %v1376_v13 = vld [vmem:[#allocation5 + $0x2c] sm:$0xf0]  ;;  %v1374_v14 = vld [vmem:[#allocation5 + $0x24] sm:$0xf]  ;;  %v1086_v15 = vld [vmem:[#allocation5 + $0x30] sm:$0xf0] }
  0x2e   :  { %2208 = vst [vmem:[#allocation23_spill] sm:$0xff] %v1822_v9  ;;  %v1092_v16 = vld [vmem:[#allocation5 + $0x28] sm:$0xf]  ;;  %v1377_v17 = vld [vmem:[#allocation5 + $0x34] sm:$0xf0]  ;;  %v1830_v24 = vor.u32 %v1376_v13, %v1084_v12  ;;  %v1832_v25 = vor.u32 %v1374_v14, %v1086_v15  ;;  %v179_v0 = vld [vmem:[#allocation2] sm:$0xff] }
  0x2f   :  { %516 = vmatpush.bf16.xpose.msra.mxu0 %v1782_v32  ;;  %2209 = vst [vmem:[#allocation24_spill] sm:$0xff] %v1824_v10  ;;  %v1375_v18 = vld [vmem:[#allocation5 + $0x2c] sm:$0xf]  ;;  %v1094_v19 = vld [vmem:[#allocation5 + $0x38] sm:$0xf0]  ;;  %v1834_v26 = vor.u32 %v1377_v17, %v1092_v16  ;;  %v1865_v15 = vpack.c.bf16 %v179_v0, %v179_v0  ;;  %s1037_s29 = sshll.u32 %s2164_s6, 4  ;;  %s1038_s29 = int_to_ptr.hbm [resolvable:$true] %s1037_s29 }
  0x30   :  { %529 = vmatpush.bf16.xpose.msra.mxu1 %v1784_v33  ;;  %v1836_v27 = vor.u32 %v1375_v18, %v1094_v19  ;;  %v1068_v28 = vld [vmem:[#allocation5] sm:$0xf]  ;;  %v1372_v29 = vld [vmem:[#allocation5 + $0xc] sm:$0xf0]  ;;  %v1370_v30 = vld [vmem:[#allocation5 + $0x4] sm:$0xf]  ;;  %v1868_v19 = vpack.c.bf16 %v181_v1, %v181_v1 }
  0x31   :  { %542 = vmatpush.bf16.xpose.msra.mxu2 %v1786_v34  ;;  %555 = vmatpush.bf16.xpose.msra.mxu3 %v1788_v35  ;;  %2210 = vst [vmem:[#allocation25_spill] sm:$0xff] %v1834_v26  ;;  %v1070_v31 = vld [vmem:[#allocation5 + $0x10] sm:$0xf0]  ;;  %v1076_v36 = vld [vmem:[#allocation5 + $0x8] sm:$0xf]  ;;  %v1842_v43 = vor.u32 %v1372_v29, %v1068_v28  ;;  %v182_v4 = vld [vmem:[#allocation2 + $0x18] sm:$0xff] }
  0x32   :  { %2211 = vst [vmem:[#allocation26_spill] sm:$0xff] %v1836_v27  ;;  %v1373_v37 = vld [vmem:[#allocation5 + $0x14] sm:$0xf0]  ;;  %v1371_v38 = vld [vmem:[#allocation5 + $0xc] sm:$0xf]  ;;  %v1844_v51 = vor.u32 %v1370_v30, %v1070_v31  ;;  %v1872_v31 = vpack.c.bf16 %v182_v4, %v182_v4  ;;  %s1692_s30 = smov [#allocation13]  }
  0x33   :  { %v1078_v39 = vld [vmem:[#allocation5 + $0x18] sm:$0xf0]  ;;  %v1308_v40 = vld [vmem:[#allocation5 + $0x1e0] sm:$0xf]  ;;  %v1432_v41 = vld [vmem:[#allocation5 + $0x1ec] sm:$0xf0]  ;;  %v1846_v52 = vor.u32 %v1373_v37, %v1076_v36 }
  0x34   :  { %v1430_v42 = vld [vmem:[#allocation5 + $0x1e4] sm:$0xf]  ;;  %v1310_v48 = vld [vmem:[#allocation5 + $0x1f0] sm:$0xf0]  ;;  %v1316_v49 = vld [vmem:[#allocation5 + $0x1e8] sm:$0xf]  ;;  %v1848_v55 = vor.u32 %v1371_v38, %v1078_v39  ;;  %v1850_v60 = vor.u32 %v1432_v41, %v1308_v40 }
  0x35   :  { %v1433_v50 = vld [vmem:[#allocation5 + $0x1f4] sm:$0xf0]  ;;  %2212 = vst [vmem:[#allocation27_spill] sm:$0xff] %v1844_v51  ;;  %v1431_v53 = vld [vmem:[#allocation5 + $0x1ec] sm:$0xf]  ;;  %v1852_v61 = vor.u32 %v1430_v42, %v1310_v48  ;;  %s1035_s8 = sshll.u32 %s1692_s30, 4  ;;  %s1036_s8 = int_to_ptr.vmem [resolvable:$true] %s1035_s8 }
  0x36   :  { %2213 = vst [vmem:[#allocation28_spill] sm:$0xff] %v1846_v52  ;;  %v1318_v54 = vld [vmem:[#allocation5 + $0x1f8] sm:$0xf0]  ;;  %v1854_v62 = vor.u32 %v1433_v50, %v1316_v49  ;;  %v180_v2 = vld [vmem:[#allocation2 + $0x8] sm:$0xff]  ;;  %v1292_v12 = vld [vmem:[#allocation5 + $0x1c0] sm:$0xf] }
  0x37   :  { %517 = vmatpush.bf16.xpose.msra.mxu0 %v1794_v44  ;;  %2214 = vst [vmem:[#allocation29_spill] sm:$0xff] %v1848_v55  ;;  %v1857_v63 = vor.u32 %v1431_v53, %v1318_v54  ;;  %v1428_v13 = vld [vmem:[#allocation5 + $0x1cc] sm:$0xf0]  ;;  %v1426_v14 = vld [vmem:[#allocation5 + $0x1c4] sm:$0xf]  ;;  %v1870_v28 = vpack.c.bf16 %v180_v2, %v180_v2  ;;  %s1693_s6 = smov [#allocation14]  }
  0x38   :  { %530 = vmatpush.bf16.xpose.msra.mxu1 %v1796_v45  ;;  %2215 = vst [vmem:[#allocation30_spill] sm:$0xff] %v1852_v61  ;;  %v1294_v16 = vld [vmem:[#allocation5 + $0x1d0] sm:$0xf0]  ;;  %v1300_v17 = vld [vmem:[#allocation5 + $0x1c8] sm:$0xf]  ;;  %v1874_v36 = vor.u32 %v1428_v13, %v1292_v12  ;;  %s1046_s9 = sshll.u32 %s1693_s6, 4  ;;  %s1047_s9 = int_to_ptr.vmem [resolvable:$true] %s1046_s9 }
  0x39   :  { %543 = vmatpush.bf16.xpose.msra.mxu2 %v1798_v46  ;;  %556 = vmatpush.bf16.xpose.msra.mxu3 %v1800_v47  ;;  %2216 = vst [vmem:[#allocation31_spill] sm:$0xff] %v1857_v63  ;;  %v1429_v18 = vld [vmem:[#allocation5 + $0x1d4] sm:$0xf0]  ;;  %v1427_v29 = vld [vmem:[#allocation5 + $0x1cc] sm:$0xf]  ;;  %v1876_v37 = vor.u32 %v1426_v14, %v1294_v16  ;;  %s1048_s12 = sshll.u32 %s2165_s7, 4  ;;  %s1049_s12 = int_to_ptr.hbm [resolvable:$true] %s1048_s12 }
  0x3a   :  { %v1302_v30 = vld [vmem:[#allocation5 + $0x1d8] sm:$0xf0]  ;;  %v1878_v38 = vor.u32 %v1429_v18, %v1300_v17  ;;  %v1276_v40 = vld [vmem:[#allocation5 + $0x1a0] sm:$0xf]  ;;  %v1424_v41 = vld [vmem:[#allocation5 + $0x1ac] sm:$0xf0] }
  0x3b   :  { %2217 = vst [vmem:[#allocation32_spill] sm:$0xff] %v1876_v37  ;;  %v1881_v39 = vor.u32 %v1427_v29, %v1302_v30  ;;  %v1422_v42 = vld [vmem:[#allocation5 + $0x1a4] sm:$0xf]  ;;  %v1278_v48 = vld [vmem:[#allocation5 + $0x1b0] sm:$0xf0]  ;;  %v1890_v0 = vor.u32 %v1424_v41, %v1276_v40 }
  0x3c   :  { %v1284_v49 = vld [vmem:[#allocation5 + $0x1a8] sm:$0xf]  ;;  %v1425_v50 = vld [vmem:[#allocation5 + $0x1b4] sm:$0xf0]  ;;  %v1423_v53 = vld [vmem:[#allocation5 + $0x1ac] sm:$0xf]  ;;  %v1892_v1 = vor.u32 %v1422_v42, %v1278_v48 }
  0x3d   :  { %2218 = vst [vmem:[#allocation33_spill] sm:$0xff] %v1881_v39  ;;  %v1286_v54 = vld [vmem:[#allocation5 + $0x1b8] sm:$0xf0]  ;;  %v1894_v2 = vor.u32 %v1425_v50, %v1284_v49  ;;  %v1260_v12 = vld [vmem:[#allocation5 + $0x180] sm:$0xf] }
  0x3e   :  { %2219 = vst [vmem:[#allocation34_spill] sm:$0xff] %v1892_v1  ;;  %v1896_v4 = vor.u32 %v1423_v53, %v1286_v54  ;;  %v1420_v13 = vld [vmem:[#allocation5 + $0x18c] sm:$0xf0]  ;;  %v1418_v14 = vld [vmem:[#allocation5 + $0x184] sm:$0xf] }
  0x3f   :  { %518 = vmatpush.bf16.xpose.msra.mxu0 %v1806_v56  ;;  %v1262_v16 = vld [vmem:[#allocation5 + $0x190] sm:$0xf0]  ;;  %v1268_v17 = vld [vmem:[#allocation5 + $0x188] sm:$0xf]  ;;  %v1421_v18 = vld [vmem:[#allocation5 + $0x194] sm:$0xf0]  ;;  %v1902_v40 = vor.u32 %v1420_v13, %v1260_v12 }
  0x40   :  { %531 = vmatpush.bf16.xpose.msra.mxu1 %v1808_v57  ;;  %2220 = vst [vmem:[#allocation35_spill] sm:$0xff] %v1896_v4  ;;  %v1419_v29 = vld [vmem:[#allocation5 + $0x18c] sm:$0xf]  ;;  %v1270_v30 = vld [vmem:[#allocation5 + $0x198] sm:$0xf0]  ;;  %v1904_v41 = vor.u32 %v1418_v14, %v1262_v16  ;;  %v1906_v42 = vor.u32 %v1421_v18, %v1268_v17 }
  0x41   :  { %544 = vmatpush.bf16.xpose.msra.mxu2 %v1810_v58  ;;  %557 = vmatpush.bf16.xpose.msra.mxu3 %v1812_v59  ;;  %v1908_v48 = vor.u32 %v1419_v29, %v1270_v30  ;;  %v1244_v49 = vld [vmem:[#allocation5 + $0x160] sm:$0xf]  ;;  %v1416_v50 = vld [vmem:[#allocation5 + $0x16c] sm:$0xf0]  ;;  %v1414_v53 = vld [vmem:[#allocation5 + $0x164] sm:$0xf] }
  0x42   :  { %2221 = vst [vmem:[#allocation36_spill] sm:$0xff] %v1904_v41  ;;  %v1246_v54 = vld [vmem:[#allocation5 + $0x170] sm:$0xf0]  ;;  %v1252_v12 = vld [vmem:[#allocation5 + $0x168] sm:$0xf]  ;;  %v1914_v17 = vor.u32 %v1416_v50, %v1244_v49 }
  0x43   :  { %2222 = vst [vmem:[#allocation37_spill] sm:$0xff] %v1908_v48  ;;  %v1417_v13 = vld [vmem:[#allocation5 + $0x174] sm:$0xf0]  ;;  %v1415_v14 = vld [vmem:[#allocation5 + $0x16c] sm:$0xf]  ;;  %v1916_v18 = vor.u32 %v1414_v53, %v1246_v54 }
  0x44   :  { %v1254_v16 = vld [vmem:[#allocation5 + $0x178] sm:$0xf0]  ;;  %v1918_v29 = vor.u32 %v1417_v13, %v1252_v12  ;;  %v1236_v49 = vld [vmem:[#allocation5 + $0x148] sm:$0xf]  ;;  %v1413_v50 = vld [vmem:[#allocation5 + $0x154] sm:$0xf0] }
  0x45   :  { %2223 = vst [vmem:[#allocation38_spill] sm:$0xff] %v1916_v18  ;;  %v1920_v30 = vor.u32 %v1415_v14, %v1254_v16  ;;  %v1411_v53 = vld [vmem:[#allocation5 + $0x14c] sm:$0xf]  ;;  %v1238_v54 = vld [vmem:[#allocation5 + $0x158] sm:$0xf0]  ;;  %v1930_v14 = vor.u32 %v1413_v50, %v1236_v49 }
  0x46   :  { %2224 = vst [vmem:[#allocation39_spill] sm:$0xff] %v1918_v29  ;;  %v1932_v16 = vor.u32 %v1411_v53, %v1238_v54  ;;  %v1402_v59 = vld [vmem:[#allocation5 + $0x104] sm:$0xf] }
  0x47   :  { %519 = vmatpush.bf16.xpose.msra.mxu0 %v1818_v5  ;;  %2225 = vst [vmem:[#allocation40_spill] sm:$0xff] %v1920_v30 }
  0x48   :  { %532 = vmatpush.bf16.xpose.msra.mxu1 %v1820_v6  ;;  %2227 = vst [vmem:[#allocation42_spill] sm:$0xff] %v1930_v14 }
  0x49   :  { %545 = vmatpush.bf16.xpose.msra.mxu2 %v1822_v9  ;;  %558 = vmatpush.bf16.xpose.msra.mxu3 %v1824_v10  ;;  %2228 = vst [vmem:[#allocation43_spill] sm:$0xff] %v1932_v16  ;;  %v1212_v10 = vld [vmem:[#allocation5 + $0x120] sm:$0xf]  ;;  %v1406_v9 = vld [vmem:[#allocation5 + $0x124] sm:$0xf] }
  0x4f   :  { %520 = vmatpush.bf16.xpose.msra.mxu0 %v1830_v24 }
  0x50   :  { %533 = vmatpush.bf16.xpose.msra.mxu1 %v1832_v25 }
  0x51   :  { %546 = vmatpush.bf16.xpose.msra.mxu2 %v1834_v26  ;;  %559 = vmatpush.bf16.xpose.msra.mxu3 %v1836_v27  ;;  %v1410_v27 = vld [vmem:[#allocation5 + $0x144] sm:$0xf]  ;;  %v1230_v26 = vld [vmem:[#allocation5 + $0x150] sm:$0xf0] }
  0x52   :  { %v1928_v13 = vor.u32 %v1410_v27, %v1230_v26  ;;  %v1407_v26 = vld [vmem:[#allocation5 + $0x12c] sm:$0xf]  ;;  %v1222_v27 = vld [vmem:[#allocation5 + $0x138] sm:$0xf0] }
  0x53   :  { %v1944_v54 = vor.u32 %v1407_v26, %v1222_v27 }
  0x54   :  { %2226 = vst [vmem:[#allocation41_spill] sm:$0xff] %v1928_v13 }
  0x55   :  { %2231 = vst [vmem:[#allocation46_spill] sm:$0xff] %v1944_v54 }
  0x57   :  { %521 = vmatpush.bf16.xpose.msra.mxu0 %v1842_v43 }
  0x58   :  { %534 = vmatpush.bf16.xpose.msra.mxu1 %v1844_v51 }
  0x59   :  { %547 = vmatpush.bf16.xpose.msra.mxu2 %v1846_v52  ;;  %560 = vmatpush.bf16.xpose.msra.mxu3 %v1848_v55  ;;  %v1228_v55 = vld [vmem:[#allocation5 + $0x140] sm:$0xf]  ;;  %v1412_v52 = vld [vmem:[#allocation5 + $0x14c] sm:$0xf0] }
  0x5a   :  { %v1926_v12 = vor.u32 %v1412_v52, %v1228_v55  ;;  %v1220_v52 = vld [vmem:[#allocation5 + $0x128] sm:$0xf]  ;;  %v1409_v55 = vld [vmem:[#allocation5 + $0x134] sm:$0xf0] }
  0x5b   :  { %v1942_v53 = vor.u32 %v1409_v55, %v1220_v52 }
  0x5d   :  { %2230 = vst [vmem:[#allocation45_spill] sm:$0xff] %v1942_v53 }
  0x5e   :  { %522 = vmatmul.bf16.vlgmr.msra.gmra.mxu0 %v1865_v15 }
  0x5f   :  { %566 = vmatpush.bf16.xpose.msrb.mxu0 %v1850_v60  ;;  %535 = vmatmul.bf16.vlgmr.msra.gmra.mxu1 %v1870_v28 }
  0x60   :  { %579 = vmatpush.bf16.xpose.msrb.mxu1 %v1852_v61  ;;  %548 = vmatmul.bf16.vlgmr.msra.gmra.mxu2 %v1868_v19 }
  0x61   :  { %592 = vmatpush.bf16.xpose.msrb.mxu2 %v1854_v62  ;;  %605 = vmatpush.bf16.xpose.msrb.mxu3 %v1857_v63 }
  0x62   :  { %561 = vmatmul.bf16.vlgmr.msra.gmra.mxu3 %v1872_v31 }
  0x67   :  { %567 = vmatpush.bf16.xpose.msrb.mxu0 %v1874_v36 }
  0x68   :  { %580 = vmatpush.bf16.xpose.msrb.mxu1 %v1876_v37 }
  0x69   :  { %593 = vmatpush.bf16.xpose.msrb.mxu2 %v1878_v38  ;;  %606 = vmatpush.bf16.xpose.msrb.mxu3 %v1881_v39 }
  0x6f   :  { %568 = vmatpush.bf16.xpose.msrb.mxu0 %v1890_v0 }
  0x70   :  { %581 = vmatpush.bf16.xpose.msrb.mxu1 %v1892_v1 }
  0x71   :  { %594 = vmatpush.bf16.xpose.msrb.mxu2 %v1894_v2  ;;  %607 = vmatpush.bf16.xpose.msrb.mxu3 %v1896_v4 }
  0x77   :  { %569 = vmatpush.bf16.xpose.msrb.mxu0 %v1902_v40 }
  0x78   :  { %582 = vmatpush.bf16.xpose.msrb.mxu1 %v1904_v41 }
  0x79   :  { %595 = vmatpush.bf16.xpose.msrb.mxu2 %v1906_v42  ;;  %608 = vmatpush.bf16.xpose.msrb.mxu3 %v1908_v48  ;;  %v1198_v48 = vld [vmem:[#allocation5 + $0x110] sm:$0xf0] }
  0x7a   :  { %v1952_v55 = vor.u32 %v1402_v59, %v1198_v48  ;;  %v2236_v59 = vld [vmem:[#allocation37_spill] sm:$0xff]  ;;  %v2241_v48 = vld [vmem:[#allocation24_spill] sm:$0xff] }
  0x7c   :  { %2233 = vst [vmem:[#allocation48_spill] sm:$0xff] %v1952_v55 }
  0x7f   :  { %570 = vmatpush.bf16.xpose.msrb.mxu0 %v1914_v17 }
  0x80   :  { %583 = vmatpush.bf16.xpose.msrb.mxu1 %v1916_v18 }
  0x81   :  { %596 = vmatpush.bf16.xpose.msrb.mxu2 %v1918_v29  ;;  %609 = vmatpush.bf16.xpose.msrb.mxu3 %v1920_v30  ;;  %v1408_v30 = vld [vmem:[#allocation5 + $0x12c] sm:$0xf0]  ;;  %v1214_v29 = vld [vmem:[#allocation5 + $0x130] sm:$0xf0] }
  0x82   :  { %v1938_v49 = vor.u32 %v1408_v30, %v1212_v10  ;;  %v1940_v50 = vor.u32 %v1406_v9, %v1214_v29  ;;  %v1204_v10 = vld [vmem:[#allocation5 + $0x108] sm:$0xf]  ;;  %v1405_v30 = vld [vmem:[#allocation5 + $0x114] sm:$0xf0]  ;;  %v1403_v9 = vld [vmem:[#allocation5 + $0x10c] sm:$0xf] }
  0x83   :  { %v1206_v29 = vld [vmem:[#allocation5 + $0x118] sm:$0xf0]  ;;  %v1954_v26 = vor.u32 %v1405_v30, %v1204_v10 }
  0x84   :  { %2229 = vst [vmem:[#allocation44_spill] sm:$0xff] %v1940_v50  ;;  %v1956_v27 = vor.u32 %v1403_v9, %v1206_v29  ;;  %v2244_v10 = vld [vmem:[#allocation43_spill] sm:$0xff]  ;;  %v2245_v30 = vld [vmem:[#allocation26_spill] sm:$0xff]  ;;  %v2246_v9 = vld [vmem:[#allocation28_spill] sm:$0xff] }
  0x85   :  { %2234 = vst [vmem:[#allocation49_spill] sm:$0xff] %v1954_v26  ;;  %v2247_v29 = vld [vmem:[#allocation29_spill] sm:$0xff] }
  0x86   :  { %2235 = vst [vmem:[#allocation50_spill] sm:$0xff] %v1956_v27 }
  0x87   :  { %571 = vmatpush.bf16.xpose.msrb.mxu0 %v1926_v12 }
  0x88   :  { %584 = vmatpush.bf16.xpose.msrb.mxu1 %v1928_v13 }
  0x89   :  { %597 = vmatpush.bf16.xpose.msrb.mxu2 %v1930_v14  ;;  %610 = vmatpush.bf16.xpose.msrb.mxu3 %v1932_v16  ;;  %v1196_v16 = vld [vmem:[#allocation5 + $0x100] sm:$0xf]  ;;  %v1404_v14 = vld [vmem:[#allocation5 + $0x10c] sm:$0xf0] }
  0x8a   :  { %v1950_v52 = vor.u32 %v1404_v14, %v1196_v16  ;;  %v2242_v14 = vld [vmem:[#allocation42_spill] sm:$0xff]  ;;  %v2243_v16 = vld [vmem:[#allocation25_spill] sm:$0xff] }
  0x8c   :  { %2232 = vst [vmem:[#allocation47_spill] sm:$0xff] %v1950_v52 }
  0x8f   :  { %572 = vmatpush.bf16.xpose.msrb.mxu0 %v1938_v49 }
  0x90   :  { %585 = vmatpush.bf16.xpose.msrb.mxu1 %v1940_v50 }
  0x91   :  { %598 = vmatpush.bf16.xpose.msrb.mxu2 %v1942_v53  ;;  %611 = vmatpush.bf16.xpose.msrb.mxu3 %v1944_v54 }
  0x97   :  { %573 = vmatpush.bf16.xpose.msrb.mxu0 %v1950_v52 }
  0x98   :  { %586 = vmatpush.bf16.xpose.msrb.mxu1 %v1952_v55 }
  0x99   :  { %599 = vmatpush.bf16.xpose.msrb.mxu2 %v1954_v26  ;;  %612 = vmatpush.bf16.xpose.msrb.mxu3 %v1956_v27 }
  0x9e   :  { %574 = vmatmul.bf16.vlgmr.msrb.gmra.mxu0 %v1865_v15  ;;  %v2237_v15 = vld [vmem:[#allocation22_spill] sm:$0xff] }
  0x9f   :  { %677 = vmatpush.bf16.msra.mxu0 %v1758_v3  ;;  %587 = vmatmul.bf16.vlgmr.msrb.gmra.mxu1 %v1870_v28  ;;  %v2239_v28 = vld [vmem:[#allocation23_spill] sm:$0xff] }
  0xa0   :  { %690 = vmatpush.bf16.msra.mxu1 %v1850_v60  ;;  %600 = vmatmul.bf16.vlgmr.msrb.gmra.mxu2 %v1868_v19  ;;  %v2238_v19 = vld [vmem:[#allocation39_spill] sm:$0xff] }
  0xa1   :  { %703 = vmatpush.bf16.msra.mxu2 %v1760_v7  ;;  %716 = vmatpush.bf16.msra.mxu3 %v1852_v61 }
  0xa2   :  { %613 = vmatmul.bf16.vlgmr.msrb.gmra.mxu3 %v1872_v31  ;;  %v2240_v31 = vld [vmem:[#allocation40_spill] sm:$0xff] }
  0xa3   :  { %678 = vmatpush.bf16.msra.mxu0 %v1770_v20 }
  0xa4   :  { %691 = vmatpush.bf16.msra.mxu1 %v1874_v36 }
  0xa5   :  { %704 = vmatpush.bf16.msra.mxu2 %v1772_v21  ;;  %717 = vmatpush.bf16.msra.mxu3 %v1876_v37 }
  0xa7   :  { %679 = vmatpush.bf16.msra.mxu0 %v1782_v32 }
  0xa8   :  { %692 = vmatpush.bf16.msra.mxu1 %v1890_v0 }
  0xa9   :  { %705 = vmatpush.bf16.msra.mxu2 %v1784_v33  ;;  %718 = vmatpush.bf16.msra.mxu3 %v1892_v1 }
  0xab   :  { %680 = vmatpush.bf16.msra.mxu0 %v1794_v44 }
  0xac   :  { %693 = vmatpush.bf16.msra.mxu1 %v1902_v40 }
  0xad   :  { %706 = vmatpush.bf16.msra.mxu2 %v1796_v45  ;;  %719 = vmatpush.bf16.msra.mxu3 %v1904_v41 }
  0xaf   :  { %681 = vmatpush.bf16.msra.mxu0 %v1806_v56 }
  0xb0   :  { %694 = vmatpush.bf16.msra.mxu1 %v1914_v17 }
  0xb1   :  { %707 = vmatpush.bf16.msra.mxu2 %v1808_v57  ;;  %720 = vmatpush.bf16.msra.mxu3 %v1916_v18 }
  0xb3   :  { %682 = vmatpush.bf16.msra.mxu0 %v1818_v5 }
  0xb4   :  { %695 = vmatpush.bf16.msra.mxu1 %v1926_v12 }
  0xb5   :  { %708 = vmatpush.bf16.msra.mxu2 %v1820_v6  ;;  %721 = vmatpush.bf16.msra.mxu3 %v1928_v13 }
  0xb7   :  { %683 = vmatpush.bf16.msra.mxu0 %v1830_v24 }
  0xb8   :  { %696 = vmatpush.bf16.msra.mxu1 %v1938_v49 }
  0xb9   :  { %709 = vmatpush.bf16.msra.mxu2 %v1832_v25  ;;  %722 = vmatpush.bf16.msra.mxu3 %v1940_v50 }
  0xbb   :  { %684 = vmatpush.bf16.msra.mxu0 %v1842_v43 }
  0xbc   :  { %697 = vmatpush.bf16.msra.mxu1 %v1950_v52 }
  0xbd   :  { %710 = vmatpush.bf16.msra.mxu2 %v1844_v51  ;;  %723 = vmatpush.bf16.msra.mxu3 %v1952_v55  ;;  %v2030_v55 = vld [vmem:[#allocation7] sm:$0x3] }
  0xbe   :  { %v190_v50 = vperm.slane %v2030_v55, 0 }
  0xbf   :  { %729 = vmatpush.bf16.msrb.mxu0 %v1762_v8 }
  0xc0   :  { %742 = vmatpush.bf16.msrb.mxu1 %v1854_v62 }
  0xc1   :  { %755 = vmatpush.bf16.msrb.mxu2 %v1765_v11  ;;  %768 = vmatpush.bf16.msrb.mxu3 %v1857_v63 }
  0xc3   :  { %730 = vmatpush.bf16.msrb.mxu0 %v1774_v22 }
  0xc4   :  { %743 = vmatpush.bf16.msrb.mxu1 %v1878_v38 }
  0xc5   :  { %756 = vmatpush.bf16.msrb.mxu2 %v1776_v23  ;;  %769 = vmatpush.bf16.msrb.mxu3 %v1881_v39 }
  0xc7   :  { %731 = vmatpush.bf16.msrb.mxu0 %v1786_v34 }
  0xc8   :  { %744 = vmatpush.bf16.msrb.mxu1 %v1894_v2 }
  0xc9   :  { %757 = vmatpush.bf16.msrb.mxu2 %v1788_v35  ;;  %770 = vmatpush.bf16.msrb.mxu3 %v1896_v4 }
  0xcb   :  { %732 = vmatpush.bf16.msrb.mxu0 %v1798_v46 }
  0xcc   :  { %745 = vmatpush.bf16.msrb.mxu1 %v1906_v42 }
  0xcd   :  { %758 = vmatpush.bf16.msrb.mxu2 %v1800_v47  ;;  %771 = vmatpush.bf16.msrb.mxu3 %v2236_v59 }
  0xcf   :  { %733 = vmatpush.bf16.msrb.mxu0 %v1810_v58 }
  0xd0   :  { %746 = vmatpush.bf16.msrb.mxu1 %v2238_v19 }
  0xd1   :  { %759 = vmatpush.bf16.msrb.mxu2 %v2237_v15  ;;  %772 = vmatpush.bf16.msrb.mxu3 %v2240_v31 }
  0xd3   :  { %734 = vmatpush.bf16.msrb.mxu0 %v2239_v28 }
  0xd4   :  { %747 = vmatpush.bf16.msrb.mxu1 %v2242_v14 }
  0xd5   :  { %760 = vmatpush.bf16.msrb.mxu2 %v2241_v48  ;;  %773 = vmatpush.bf16.msrb.mxu3 %v2244_v10 }
  0xd7   :  { %735 = vmatpush.bf16.msrb.mxu0 %v2243_v16 }
  0xd8   :  { %748 = vmatpush.bf16.msrb.mxu1 %v1942_v53 }
  0xd9   :  { %761 = vmatpush.bf16.msrb.mxu2 %v2245_v30  ;;  %774 = vmatpush.bf16.msrb.mxu3 %v1944_v54 }
  0xdb   :  { %736 = vmatpush.bf16.msrb.mxu0 %v2246_v9  ;;  %v523_v13 = vpop.f32.mrf.mxu0 }
  0xdc   :  { %749 = vmatpush.bf16.msrb.mxu1 %v1954_v26  ;;  %v524_v10 = vadd.f32 %v523_v13, %v190_v50  ;;  %v536_v31 = vpop.f32.mrf.mxu1 }
  0xdd   :  { %762 = vmatpush.bf16.msrb.mxu2 %v2247_v29  ;;  %775 = vmatpush.bf16.msrb.mxu3 %v1956_v27 }
  0xde   :  { %v537_v18 = vadd.f32 %v536_v31, %v524_v10 }
  0xe3   :  { %v549_v59 = vpop.f32.mrf.mxu2  ;;  %v525_v54 = vpop.f32.mrf.mxu0 }
  0xe4   :  { %v550_v41 = vadd.f32 %v549_v59, %v537_v18  ;;  %v538_v1 = vpop.f32.mrf.mxu1 }
  0xe5   :  { %v562_v4 = vpop.f32.mrf.mxu3  ;;  %v183_v1 = vld [vmem:[#allocation10] sm:$0xff] }
  0xe6   :  { %v563_v39 = vadd.f32 %v562_v4, %v550_v41  ;;  %v1690_v4 = vmov 1.0|1.0  }
  0xe8   :  { %v1322_v37 = vmul.f32 -1.442695, %v563_v39 }
  0xea   :  { %1446 = vpow2.f32 %v1322_v37 }
  0xeb   :  { %v551_v26 = vpop.f32.mrf.mxu2 }
  0xed   :  { %v564_v27 = vpop.f32.mrf.mxu3 }
  0xf0   :  { %v1447_v52 = vpop.eup %1446 }
  0xf1   :  { %v624_v63 = vadd.f32 1.0, %v1447_v52 }
  0xf3   :  { %1448 = vrcp.f32 %v624_v63  ;;  %v637_v51 = vand.u32 2147483648, %v624_v63  ;;  %vm631_vm0 = vweird.f32 %v624_v63  ;;  %v635_v13 = vand.u32 2147483647, %v624_v63 }
  0xf5   :  { %v638_v18 = vor.u32 1.1754944e-38, %v637_v51  ;;  %vm636_vm3 = vcmp.eq.f32.partialorder %v635_v13, 8.507059e+37  ;;  %v191_v51 = vperm.slane %v2030_v55, 1 }
  0xf9   :  { %v1449_v61 = vpop.eup %1448 }
  0xfa   :  { %v627_v29 = vmul.f32 %v1449_v61, %v624_v63  ;;  %vm632_vm1 = vweird.f32 %v1449_v61 }
  0xfb   :  { %vm633_vm2 = vmor %vm631_vm0, %vm632_vm1 }
  0xfc   :  { %v628_v53 = vsub.f32 1.0, %v627_v29 }
  0xfe   :  { %v629_v31 = vmul.f32 %v1449_v61, %v628_v53 }
 0x100   :  { %v630_v54 = vadd.f32 %v1449_v61, %v629_v31 }
 0x102   :  { %v634_v39 = vsel %vm633_vm2, %v1449_v61, %v630_v54 }
 0x103   :  { %v639_v37 = vsel %vm636_vm3, %v638_v18, %v634_v39 }
 0x104   :  { %vm656_vm4 = vcmp.lt.f32.partialorder %v183_v1, %v639_v37 }
 0x105   :  { %vm1326_vm5 = vmpackc.low %vm656_vm4, %vm656_vm4 }
 0x106   :  { %1327 = vmatmul.msk.bf16.vlgmr.msra.gmra.mxu0 %vm1326_vm5, %v1690_v4  ;;  %1331 = vmatmul.msk.bf16.vlgmr.msra.gmra.mxu2 %vm1326_vm5, %v1690_v4 }
 0x107   :  { %876 = vmatpush.bf16.xpose.msra.mxu0 %v1758_v3  ;;  %902 = vmatpush.bf16.xpose.msra.mxu2 %v1762_v8 }
 0x10f   :  { %877 = vmatpush.bf16.xpose.msra.mxu0 %v1770_v20  ;;  %903 = vmatpush.bf16.xpose.msra.mxu2 %v1774_v22 }
 0x116   :  { %1335 = vmatmul.msk.bf16.vlgmr.msrb.gmra.mxu0 %vm1326_vm5, %v1690_v4  ;;  %1339 = vmatmul.msk.bf16.vlgmr.msrb.gmra.mxu2 %vm1326_vm5, %v1690_v4 }
 0x117   :  { %878 = vmatpush.bf16.xpose.msra.mxu0 %v1782_v32  ;;  %904 = vmatpush.bf16.xpose.msra.mxu2 %v1786_v34 }
 0x11b   :  { %v575_v63 = vpop.f32.mrf.mxu0 }
 0x11c   :  { %v576_v61 = vadd.f32 %v575_v63, %v191_v51  ;;  %v588_v41 = vpop.f32.mrf.mxu1 }
 0x11e   :  { %v589_v3 = vadd.f32 %v588_v41, %v576_v61 }
 0x11f   :  { %879 = vmatpush.bf16.xpose.msra.mxu0 %v1794_v44  ;;  %905 = vmatpush.bf16.xpose.msra.mxu2 %v1798_v46 }
 0x123   :  { %v601_v8 = vpop.f32.mrf.mxu2  ;;  %v577_v22 = vpop.f32.mrf.mxu0 }
 0x124   :  { %v602_v20 = vadd.f32 %v601_v8, %v589_v3  ;;  %v590_v52 = vpop.f32.mrf.mxu1 }
 0x125   :  { %v614_v53 = vpop.f32.mrf.mxu3 }
 0x126   :  { %v615_v26 = vadd.f32 %v614_v53, %v602_v20 }
 0x127   :  { %880 = vmatpush.bf16.xpose.msra.mxu0 %v1806_v56  ;;  %906 = vmatpush.bf16.xpose.msra.mxu2 %v1810_v58  ;;  %v184_v58 = vld [vmem:[#allocation10 + $0x8] sm:$0xff] }
 0x128   :  { %v1323_v27 = vmul.f32 -1.442695, %v615_v26 }
 0x12a   :  { %1450 = vpow2.f32 %v1323_v27 }
 0x12b   :  { %v603_v59 = vpop.f32.mrf.mxu2 }
 0x12d   :  { %v616_v10 = vpop.f32.mrf.mxu3 }
 0x12f   :  { %881 = vmatpush.bf16.xpose.msra.mxu0 %v1818_v5  ;;  %907 = vmatpush.bf16.xpose.msra.mxu2 %v2239_v28  ;;  %v2266_v28 = vld [vmem:[#allocation46_spill] sm:$0xff] }
 0x130   :  { %v1451_v32 = vpop.eup %1450 }
 0x131   :  { %v625_v34 = vadd.f32 1.0, %v1451_v32 }
 0x133   :  { %1452 = vrcp.f32 %v625_v34  ;;  %v652_v46 = vand.u32 2147483648, %v625_v34  ;;  %v650_v56 = vand.u32 2147483647, %v625_v34  ;;  %vm646_vm7 = vweird.f32 %v625_v34 }
 0x135   :  { %v653_v54 = vor.u32 1.1754944e-38, %v652_v46  ;;  %vm651_vm9 = vcmp.eq.f32.partialorder %v650_v56, 8.507059e+37 }
 0x137   :  { %882 = vmatpush.bf16.xpose.msra.mxu0 %v1830_v24  ;;  %908 = vmatpush.bf16.xpose.msra.mxu2 %v2243_v16  ;;  %v178_v16 = vld [vmem:[#allocation8] sm:$0xf] }
 0x138   :  { %v670_v37 = vperm.slane %v178_v16, 1  ;;  %v671_v52 = vperm.slane %v178_v16, 2 }
 0x139   :  { %v1453_v29 = vpop.eup %1452 }
 0x13a   :  { %v642_v44 = vmul.f32 %v1453_v29, %v625_v34  ;;  %vm647_vm6 = vweird.f32 %v1453_v29  ;;  %v672_v34 = vperm.slane %v178_v16, 3 }
 0x13b   :  { %vm648_vm8 = vmor %vm646_vm7, %vm647_vm6 }
 0x13c   :  { %v643_v13 = vsub.f32 1.0, %v642_v44 }
 0x13e   :  { %v644_v31 = vmul.f32 %v1453_v29, %v643_v13 }
 0x13f   :  { %883 = vmatpush.bf16.xpose.msra.mxu0 %v1842_v43  ;;  %909 = vmatpush.bf16.xpose.msra.mxu2 %v2246_v9  ;;  %v2258_v43 = vld [vmem:[#allocation35_spill] sm:$0xff] }
 0x140   :  { %v645_v18 = vadd.f32 %v1453_v29, %v644_v31 }
 0x142   :  { %v649_v1 = vsel %vm648_vm8, %v1453_v29, %v645_v18 }
 0x143   :  { %v654_v5 = vsel %vm651_vm9, %v653_v54, %v649_v1 }
 0x144   :  { %vm657_vm10 = vcmp.lt.f32.partialorder %v184_v58, %v654_v5 }
 0x145   :  { %vm1328_vm11 = vmpackc.low %vm657_vm10, %vm657_vm10 }
 0x146   :  { %1329 = vmatmul.msk.bf16.vlgmr.msra.gmra.mxu1 %vm1328_vm11, %v1690_v4  ;;  %1333 = vmatmul.msk.bf16.vlgmr.msra.gmra.mxu3 %vm1328_vm11, %v1690_v4 }
 0x147   :  { %889 = vmatpush.bf16.xpose.msra.mxu1 %v1760_v7  ;;  %915 = vmatpush.bf16.xpose.msra.mxu3 %v1765_v11  ;;  %v2248_v7 = vld [vmem:[#allocation45_spill] sm:$0xff]  ;;  %v2249_v11 = vld [vmem:[#allocation27_spill] sm:$0xff] }
 0x148   :  { %928 = vmatpush.bf16.xpose.msrb.mxu0 %v1850_v60  ;;  %954 = vmatpush.bf16.xpose.msrb.mxu2 %v1854_v62 }
 0x14f   :  { %890 = vmatpush.bf16.xpose.msra.mxu1 %v1772_v21  ;;  %916 = vmatpush.bf16.xpose.msra.mxu3 %v1776_v23  ;;  %v2250_v21 = vld [vmem:[#allocation29_spill] sm:$0xff]  ;;  %v2251_v23 = vld [vmem:[#allocation30_spill] sm:$0xff] }
 0x150   :  { %929 = vmatpush.bf16.xpose.msrb.mxu0 %v1874_v36  ;;  %955 = vmatpush.bf16.xpose.msrb.mxu2 %v1878_v38  ;;  %v2259_v36 = vld [vmem:[#allocation36_spill] sm:$0xff]  ;;  %v2260_v38 = vld [vmem:[#allocation37_spill] sm:$0xff] }
 0x156   :  { %1337 = vmatmul.msk.bf16.vlgmr.msrb.gmra.mxu1 %vm1328_vm11, %v1690_v4  ;;  %1341 = vmatmul.msk.bf16.vlgmr.msrb.gmra.mxu3 %vm1328_vm11, %v1690_v4 }
 0x157   :  { %891 = vmatpush.bf16.xpose.msra.mxu1 %v1784_v33  ;;  %917 = vmatpush.bf16.xpose.msra.mxu3 %v1788_v35  ;;  %v2252_v33 = vld [vmem:[#allocation31_spill] sm:$0xff] }
 0x158   :  { %930 = vmatpush.bf16.xpose.msrb.mxu0 %v1890_v0  ;;  %956 = vmatpush.bf16.xpose.msrb.mxu2 %v1894_v2  ;;  %v2253_v35 = vld [vmem:[#allocation47_spill] sm:$0xff] }
 0x15f   :  { %892 = vmatpush.bf16.xpose.msra.mxu1 %v1796_v45  ;;  %918 = vmatpush.bf16.xpose.msra.mxu3 %v1800_v47  ;;  %v2254_v45 = vld [vmem:[#allocation49_spill] sm:$0xff]  ;;  %v2255_v47 = vld [vmem:[#allocation32_spill] sm:$0xff] }
 0x160   :  { %931 = vmatpush.bf16.xpose.msrb.mxu0 %v1902_v40  ;;  %957 = vmatpush.bf16.xpose.msrb.mxu2 %v1906_v42  ;;  %v2261_v40 = vld [vmem:[#allocation38_spill] sm:$0xff]  ;;  %v2262_v42 = vld [vmem:[#allocation40_spill] sm:$0xff] }
 0x167   :  { %893 = vmatpush.bf16.xpose.msra.mxu1 %v1808_v57  ;;  %919 = vmatpush.bf16.xpose.msra.mxu3 %v2237_v15  ;;  %v2256_v57 = vld [vmem:[#allocation33_spill] sm:$0xff]  ;;  %v2264_v15 = vld [vmem:[#allocation43_spill] sm:$0xff] }
 0x168   :  { %932 = vmatpush.bf16.xpose.msrb.mxu0 %v1914_v17  ;;  %958 = vmatpush.bf16.xpose.msrb.mxu2 %v2238_v19  ;;  %v2265_v19 = vld [vmem:[#allocation44_spill] sm:$0xff] }
 0x16f   :  { %894 = vmatpush.bf16.xpose.msra.mxu1 %v1820_v6  ;;  %920 = vmatpush.bf16.xpose.msra.mxu3 %v2241_v48  ;;  %v2267_v48 = vld [vmem:[#allocation48_spill] sm:$0xff] }
 0x170   :  { %933 = vmatpush.bf16.xpose.msrb.mxu0 %v1926_v12  ;;  %959 = vmatpush.bf16.xpose.msrb.mxu2 %v2242_v14  ;;  %v2268_v14 = vld [vmem:[#allocation50_spill] sm:$0xff] }
 0x177   :  { %895 = vmatpush.bf16.xpose.msra.mxu1 %v1832_v25  ;;  %921 = vmatpush.bf16.xpose.msra.mxu3 %v2245_v30  ;;  %v2257_v25 = vld [vmem:[#allocation34_spill] sm:$0xff]  ;;  %v669_v30 = vperm.slane %v178_v16, 0 }
 0x178   :  { %934 = vmatpush.bf16.xpose.msrb.mxu0 %v1938_v49  ;;  %960 = vmatpush.bf16.xpose.msrb.mxu2 %v2248_v7  ;;  %v2263_v49 = vld [vmem:[#allocation41_spill] sm:$0xff] }
 0x17f   :  { %896 = vmatpush.bf16.xpose.msra.mxu1 %v2249_v11  ;;  %922 = vmatpush.bf16.xpose.msra.mxu3 %v2250_v21 }
 0x180   :  { %935 = vmatpush.bf16.xpose.msrb.mxu0 %v2253_v35  ;;  %961 = vmatpush.bf16.xpose.msrb.mxu2 %v2254_v45 }
 0x183   :  { %v686_v6 = vpop.f32.mrf.mxu0 }
 0x184   :  { %v687_v9 = vadd.f32 %v686_v6, %v669_v30 }
 0x187   :  { %941 = vmatpush.bf16.xpose.msrb.mxu1 %v2251_v23  ;;  %967 = vmatpush.bf16.xpose.msrb.mxu3 %v2252_v33 }
 0x189   :  { %v712_v24 = vpop.f32.mrf.mxu2 }
 0x18a   :  { %v713_v41 = vadd.f32 %v712_v24, %v670_v37 }
 0x18b   :  { %v688_v60 = vpop.f32.mrf.mxu0 }
 0x18f   :  { %942 = vmatpush.bf16.xpose.msrb.mxu1 %v2255_v47  ;;  %968 = vmatpush.bf16.xpose.msrb.mxu3 %v2256_v57  ;;  %v658_v57 = vld [vmem:[#allocation11] sm:$0xff] }
 0x191   :  { %v714_v62 = vpop.f32.mrf.mxu2 }
 0x193   :  { %v738_v0 = vpop.f32.mrf.mxu0 }
 0x194   :  { %v739_v59 = vadd.f32 %v738_v0, %v671_v52  ;;  %v1691_v0 = vmov 0.0  }
 0x197   :  { %943 = vmatpush.bf16.xpose.msrb.mxu1 %v2257_v25  ;;  %969 = vmatpush.bf16.xpose.msrb.mxu3 %v2258_v43 }
 0x199   :  { %v764_v2 = vpop.f32.mrf.mxu2 }
 0x19a   :  { %v765_v31 = vadd.f32 %v764_v2, %v672_v34 }
 0x19b   :  { %v740_v17 = vpop.f32.mrf.mxu0 }
 0x19f   :  { %944 = vmatpush.bf16.xpose.msrb.mxu1 %v2259_v36  ;;  %970 = vmatpush.bf16.xpose.msrb.mxu3 %v2260_v38 }
 0x1a1   :  { %v766_v12 = vpop.f32.mrf.mxu2 }
 0x1a7   :  { %945 = vmatpush.bf16.xpose.msrb.mxu1 %v2261_v40  ;;  %971 = vmatpush.bf16.xpose.msrb.mxu3 %v2262_v42 }
 0x1af   :  { %946 = vmatpush.bf16.xpose.msrb.mxu1 %v2263_v49  ;;  %972 = vmatpush.bf16.xpose.msrb.mxu3 %v2264_v15  ;;  %v659_v49 = vld [vmem:[#allocation11 + $0x8] sm:$0xff] }
 0x1b7   :  { %947 = vmatpush.bf16.xpose.msrb.mxu1 %v2265_v19  ;;  %973 = vmatpush.bf16.xpose.msrb.mxu3 %v2266_v28 }
 0x1bf   :  { %948 = vmatpush.bf16.xpose.msrb.mxu1 %v2267_v48  ;;  %974 = vmatpush.bf16.xpose.msrb.mxu3 %v2268_v14 }
 0x1c3   :  { %v699_v39 = vpop.f32.mrf.mxu1 }
 0x1c4   :  { %v700_v63 = vadd.f32 %v699_v39, %v687_v9 }
 0x1c6   :  { %v1342_v61 = vmul.f32 -1.442695, %v700_v63 }
 0x1c8   :  { %1454 = vpow2.f32 %v1342_v61 }
 0x1c9   :  { %v725_v3 = vpop.f32.mrf.mxu3 }
 0x1ca   :  { %v726_v8 = vadd.f32 %v725_v3, %v713_v41 }
 0x1cb   :  { %v701_v20 = vpop.f32.mrf.mxu1 }
 0x1cc   :  { %v1343_v53 = vmul.f32 -1.442695, %v726_v8  ;;  %v660_v8 = vld [vmem:[#allocation11 + $0x10] sm:$0xff] }
 0x1ce   :  { %v1455_v22 = vpop.eup %1454  ;;  %1456 = vpow2.f32 %v1343_v53 }
 0x1cf   :  { %v793_v26 = vadd.f32 1.0, %v1455_v22 }
 0x1d1   :  { %1458 = vrcp.f32 %v793_v26  ;;  %v727_v27 = vpop.f32.mrf.mxu3  ;;  %v808_v5 = vand.u32 2147483648, %v793_v26  ;;  %v806_v21 = vand.u32 2147483647, %v793_v26  ;;  %vm802_vm13 = vweird.f32 %v793_v26 }
 0x1d3   :  { %v751_v10 = vpop.f32.mrf.mxu1  ;;  %v809_v6 = vor.u32 1.1754944e-38, %v808_v5  ;;  %vm807_vm15 = vcmp.eq.f32.partialorder %v806_v21, 8.507059e+37 }
 0x1d4   :  { %v1457_v32 = vpop.eup %1456  ;;  %v752_v29 = vadd.f32 %v751_v10, %v739_v59 }
 0x1d5   :  { %v794_v44 = vadd.f32 1.0, %v1457_v32 }
 0x1d6   :  { %v1344_v13 = vmul.f32 -1.442695, %v752_v29  ;;  %v661_v29 = vld [vmem:[#allocation11 + $0x18] sm:$0xff] }
 0x1d7   :  { %v1459_v46 = vpop.eup %1458  ;;  %1460 = vrcp.f32 %v794_v44  ;;  %v823_v62 = vand.u32 2147483648, %v794_v44  ;;  %v821_v38 = vand.u32 2147483647, %v794_v44  ;;  %vm817_vm3 = vweird.f32 %v794_v44 }
 0x1d8   :  { %v798_v56 = vmul.f32 %v1459_v46, %v793_v26  ;;  %1462 = vpow2.f32 %v1344_v13  ;;  %vm803_vm12 = vweird.f32 %v1459_v46 }
 0x1d9   :  { %v777_v18 = vpop.f32.mrf.mxu3  ;;  %vm804_vm14 = vmor %vm802_vm13, %vm803_vm12  ;;  %v824_v15 = vor.u32 1.1754944e-38, %v823_v62  ;;  %vm822_vm5 = vcmp.eq.f32.partialorder %v821_v38, 8.507059e+37 }
 0x1da   :  { %v799_v58 = vsub.f32 1.0, %v798_v56  ;;  %v778_v54 = vadd.f32 %v777_v18, %v765_v31 }
 0x1db   :  { %v753_v1 = vpop.f32.mrf.mxu1 }
 0x1dc   :  { %v1345_v7 = vmul.f32 -1.442695, %v778_v54  ;;  %v800_v11 = vmul.f32 %v1459_v46, %v799_v58 }
 0x1dd   :  { %v1461_v23 = vpop.eup %1460 }
 0x1de   :  { %v1463_v33 = vpop.eup %1462  ;;  %v813_v35 = vmul.f32 %v1461_v23, %v794_v44  ;;  %1464 = vpow2.f32 %v1345_v7  ;;  %v801_v45 = vadd.f32 %v1459_v46, %v800_v11  ;;  %vm818_vm1 = vweird.f32 %v1461_v23 }
 0x1df   :  { %v795_v47 = vadd.f32 1.0, %v1463_v33  ;;  %vm819_vm4 = vmor %vm817_vm3, %vm818_vm1 }
 0x1e0   :  { %v814_v24 = vsub.f32 1.0, %v813_v35  ;;  %v805_v25 = vsel %vm804_vm14, %v1459_v46, %v801_v45 }
 0x1e1   :  { %1466 = vrcp.f32 %v795_v47  ;;  %v779_v43 = vpop.f32.mrf.mxu3  ;;  %v810_v60 = vsel %vm807_vm15, %v809_v6, %v805_v25  ;;  %v838_v39 = vand.u32 2147483648, %v795_v47  ;;  %v836_v63 = vand.u32 2147483647, %v795_v47 }
 0x1e2   :  { %vm857_vm0 = vcmp.lt.f32.partialorder %v658_v57, %v810_v60  ;;  %v815_v36 = vmul.f32 %v1461_v23, %v814_v24  ;;  %vm832_vm9 = vweird.f32 %v795_v47 }
 0x1e3   :  { %v1346_v2 = vsel %vm857_vm0, 1.0, %v1691_v0  ;;  %vm2111_vm2 = vmpackc.low %vm857_vm0, %vm857_vm0  ;;  %v839_v20 = vor.u32 1.1754944e-38, %v838_v39  ;;  %vm837_vm11 = vcmp.eq.f32.partialorder %v836_v63, 8.507059e+37 }
 0x1e4   :  { %v1465_v42 = vpop.eup %1464  ;;  %1351 = vmatmul.msk.bf16.vlgmr.msra.gmra.mxu0 %vm2111_vm2, %v1690_v4  ;;  %1024 = vst [vmem:[#allocation13] sm:$0xff] %v1346_v2  ;;  %v816_v17 = vadd.f32 %v1461_v23, %v815_v36 }
 0x1e5   :  { %v796_v12 = vadd.f32 1.0, %v1465_v42 }
 0x1e6   :  { %v820_v19 = vsel %vm819_vm4, %v1461_v23, %v816_v17 }
 0x1e7   :  { %v1467_v28 = vpop.eup %1466  ;;  %1468 = vrcp.f32 %v796_v12  ;;  %v825_v48 = vsel %vm822_vm5, %v824_v15, %v820_v19  ;;  %v853_v26 = vand.u32 2147483648, %v796_v12  ;;  %v851_v59 = vand.u32 2147483647, %v796_v12 }
 0x1e8   :  { %v828_v14 = vmul.f32 %v1467_v28, %v795_v47  ;;  %vm858_vm6 = vcmp.lt.f32.partialorder %v659_v49, %v825_v48  ;;  %vm833_vm8 = vweird.f32 %v1467_v28  ;;  %vm847_vm15 = vweird.f32 %v796_v12 }
 0x1e9   :  { %v1347_v16 = vsel %vm858_vm6, 1.0, %v1691_v0  ;;  %vm2119_vm7 = vmpackc.low %vm858_vm6, %vm858_vm6  ;;  %v854_v44 = vor.u32 1.1754944e-38, %v853_v26  ;;  %vm852_vm1 = vcmp.eq.f32.partialorder %v851_v59, 8.507059e+37 }
 0x1ea   :  { %v829_v9 = vsub.f32 1.0, %v828_v14  ;;  %1353 = vmatmul.msk.bf16.vlgmr.msra.gmra.mxu1 %vm2119_vm7, %v1690_v4  ;;  %1025 = vst [vmem:[#allocation13 + $0x8] sm:$0xff] %v1347_v16  ;;  %vm834_vm10 = vmor %vm832_vm9, %vm833_vm8  ;;  %v870_v14 = vld [vmem:[#allocation10 + $0x10] sm:$0xff] }
 0x1ec   :  { %v830_v37 = vmul.f32 %v1467_v28, %v829_v9 }
 0x1ed   :  { %v1469_v61 = vpop.eup %1468 }
 0x1ee   :  { %v843_v41 = vmul.f32 %v1469_v61, %v796_v12  ;;  %v831_v3 = vadd.f32 %v1467_v28, %v830_v37  ;;  %vm848_vm13 = vweird.f32 %v1469_v61 }
 0x1ef   :  { %vm849_vm0 = vmor %vm847_vm15, %vm848_vm13 }
 0x1f0   :  { %v844_v53 = vsub.f32 1.0, %v843_v41  ;;  %v835_v22 = vsel %vm834_vm10, %v1467_v28, %v831_v3 }
 0x1f1   :  { %v840_v52 = vsel %vm837_vm11, %v839_v20, %v835_v22 }
 0x1f2   :  { %vm859_vm12 = vcmp.lt.f32.partialorder %v660_v8, %v840_v52  ;;  %v845_v27 = vmul.f32 %v1469_v61, %v844_v53  ;;  %v871_v53 = vld [vmem:[#allocation10 + $0x18] sm:$0xff] }
 0x1f3   :  { %v1348_v10 = vsel %vm859_vm12, 1.0, %v1691_v0  ;;  %vm2127_vm14 = vmpackc.low %vm859_vm12, %vm859_vm12 }
 0x1f4   :  { %1355 = vmatmul.msk.bf16.vlgmr.msra.gmra.mxu2 %vm2127_vm14, %v1690_v4  ;;  %1026 = vst [vmem:[#allocation13 + $0x10] sm:$0xff] %v1348_v10  ;;  %1359 = vmatmul.msk.bf16.vlgmr.msrb.gmra.mxu0 %vm2111_vm2, %v1690_v4  ;;  %v846_v34 = vadd.f32 %v1469_v61, %v845_v27 }
 0x1f6   :  { %v850_v13 = vsel %vm849_vm0, %v1469_v61, %v846_v34 }
 0x1f7   :  { %v855_v46 = vsel %vm852_vm1, %v854_v44, %v850_v13 }
 0x1f8   :  { %vm860_vm3 = vcmp.lt.f32.partialorder %v661_v29, %v855_v46 }
 0x1f9   :  { %v1349_v31 = vsel %vm860_vm3, 1.0, %v1691_v0  ;;  %vm1356_vm4 = vmpackc.low %vm860_vm3, %vm860_vm3 }
 0x1fa   :  { %1357 = vmatmul.msk.bf16.vlgmr.msra.gmra.mxu3 %vm1356_vm4, %v1690_v4  ;;  %1027 = vst [vmem:[#allocation13 + $0x18] sm:$0xff] %v1349_v31  ;;  %1361 = vmatmul.msk.bf16.vlgmr.msrb.gmra.mxu1 %vm2119_vm7, %v1690_v4 }
 0x1fb   :  { %1040 = dma.vmem_to_hbm [thread:$0]  %s1036_s8, 512, %s1038_s29, [#allocation4]  }
 0x204   :  { %1363 = vmatmul.msk.bf16.vlgmr.msrb.gmra.mxu2 %vm2127_vm14, %v1690_v4 }
 0x20a   :  { %1365 = vmatmul.msk.bf16.vlgmr.msrb.gmra.mxu3 %vm1356_vm4, %v1690_v4 }
 0x261   :  { %v885_v56 = vpop.f32.mrf.mxu0 }
 0x262   :  { %v886_v11 = vadd.f32 %v885_v56, %v190_v50 }
 0x267   :  { %v898_v18 = vpop.f32.mrf.mxu1 }
 0x268   :  { %v899_v21 = vadd.f32 %v898_v18, %v886_v11 }
 0x269   :  { %v887_v58 = vpop.f32.mrf.mxu0 }
 0x26f   :  { %v900_v54 = vpop.f32.mrf.mxu1 }
 0x271   :  { %v937_v1 = vpop.f32.mrf.mxu0 }
 0x272   :  { %v938_v43 = vadd.f32 %v937_v1, %v191_v51 }
 0x277   :  { %v911_v5 = vpop.f32.mrf.mxu2  ;;  %v950_v7 = vpop.f32.mrf.mxu1 }
 0x278   :  { %v912_v23 = vadd.f32 %v911_v5, %v899_v21  ;;  %v951_v62 = vadd.f32 %v950_v7, %v938_v43 }
 0x279   :  { %v939_v4 = vpop.f32.mrf.mxu0 }
 0x27d   :  { %v924_v33 = vpop.f32.mrf.mxu3 }
 0x27e   :  { %v925_v35 = vadd.f32 %v924_v33, %v912_v23 }
 0x27f   :  { %v913_v45 = vpop.f32.mrf.mxu2  ;;  %v952_v47 = vpop.f32.mrf.mxu1 }
 0x280   :  { %v1366_v57 = vmul.f32 -1.442695, %v925_v35 }
 0x282   :  { %1470 = vpow2.f32 %v1366_v57 }
 0x285   :  { %v926_v6 = vpop.f32.mrf.mxu3 }
 0x287   :  { %v963_v24 = vpop.f32.mrf.mxu2 }
 0x288   :  { %v1471_v25 = vpop.eup %1470  ;;  %v964_v36 = vadd.f32 %v963_v24, %v951_v62 }
 0x289   :  { %v986_v60 = vadd.f32 1.0, %v1471_v25 }
 0x28b   :  { %1472 = vrcp.f32 %v986_v60  ;;  %v999_v15 = vand.u32 2147483648, %v986_v60  ;;  %v997_v28 = vand.u32 2147483647, %v986_v60  ;;  %vm993_vm5 = vweird.f32 %v986_v60 }
 0x28d   :  { %v976_v50 = vpop.f32.mrf.mxu3  ;;  %v1000_v16 = vor.u32 1.1754944e-38, %v999_v15  ;;  %vm998_vm7 = vcmp.eq.f32.partialorder %v997_v28, 8.507059e+37 }
 0x28e   :  { %v977_v38 = vadd.f32 %v976_v50, %v964_v36 }
 0x28f   :  { %v965_v2 = vpop.f32.mrf.mxu2 }
 0x290   :  { %v1367_v40 = vmul.f32 -1.442695, %v977_v38 }
 0x291   :  { %v1473_v42 = vpop.eup %1472 }
 0x292   :  { %v989_v17 = vmul.f32 %v1473_v42, %v986_v60  ;;  %1474 = vpow2.f32 %v1367_v40  ;;  %vm994_vm2 = vweird.f32 %v1473_v42 }
 0x293   :  { %vm995_vm6 = vmor %vm993_vm5, %vm994_vm2 }
 0x294   :  { %v990_v12 = vsub.f32 1.0, %v989_v17 }
 0x295   :  { %v978_v49 = vpop.f32.mrf.mxu3 }
 0x296   :  { %v991_v19 = vmul.f32 %v1473_v42, %v990_v12 }
 0x298   :  { %v1475_v48 = vpop.eup %1474  ;;  %v992_v55 = vadd.f32 %v1473_v42, %v991_v19 }
 0x299   :  { %v987_v51 = vadd.f32 1.0, %v1475_v48 }
 0x29a   :  { %v996_v30 = vsel %vm995_vm6, %v1473_v42, %v992_v55 }
 0x29b   :  { %1476 = vrcp.f32 %v987_v51  ;;  %v1001_v9 = vsel %vm998_vm7, %v1000_v16, %v996_v30  ;;  %v1014_v41 = vand.u32 2147483648, %v987_v51  ;;  %v1012_v8 = vand.u32 2147483647, %v987_v51 }
 0x29c   :  { %vm1018_vm8 = vcmp.lt.f32.partialorder %v870_v14, %v1001_v9  ;;  %vm1008_vm10 = vweird.f32 %v987_v51 }
 0x29d   :  { %v1368_v39 = vsel %vm1018_vm8, 1.0, %v1691_v0  ;;  %v1015_v22 = vor.u32 1.1754944e-38, %v1014_v41  ;;  %vm1013_vm12 = vcmp.eq.f32.partialorder %v1012_v8, 8.507059e+37 }
 0x29e   :  { %1028 = vst [vmem:[#allocation14] sm:$0xff] %v1368_v39 }
 0x2a1   :  { %v1477_v37 = vpop.eup %1476 }
 0x2a2   :  { %v1004_v63 = vmul.f32 %v1477_v37, %v987_v51  ;;  %vm1009_vm9 = vweird.f32 %v1477_v37 }
 0x2a3   :  { %vm1010_vm11 = vmor %vm1008_vm10, %vm1009_vm9 }
 0x2a4   :  { %v1005_v61 = vsub.f32 1.0, %v1004_v63 }
 0x2a6   :  { %v1006_v3 = vmul.f32 %v1477_v37, %v1005_v61 }
 0x2a8   :  { %v1007_v20 = vadd.f32 %v1477_v37, %v1006_v3 }
 0x2aa   :  { %v1011_v52 = vsel %vm1010_vm11, %v1477_v37, %v1007_v20 }
 0x2ab   :  { %v1016_v26 = vsel %vm1013_vm12, %v1015_v22, %v1011_v52 }
 0x2ac   :  { %vm1019_vm13 = vcmp.lt.f32.partialorder %v871_v53, %v1016_v26 }
 0x2ad   :  { %v1369_v27 = vsel %vm1019_vm13, 1.0, %v1691_v0 }
 0x2ae   :  { %1029 = vst [vmem:[#allocation14 + $0x8] sm:$0xff] %v1369_v27 }
 0x2af   :  { %1051 = dma.vmem_to_hbm [thread:$0]  %s1047_s9, 256, %s1049_s12, [#allocation15]  }
 0x2b0   :  { %1678 = dma.done.wait [#allocation4], 512  }
 0x2b1   :  { %1679 = vsyncadd [#allocation4], 4294966784 }
 0x2b2   :  { %1680 = dma.done.wait [#allocation15], 256  }
 0x2b3   :  { %1681 = vsyncadd [#allocation15], 4294967040 }
 0x2b4   :  { %1060 = vsyncpa [#allocation3], 1 }
 0x2b5   :  { %1061 = vsyncpa [#allocation6], 1 }
 0x2b6   :  { %1062 = vsyncpa [#allocation9], 1 }
 0x2b7   :  { %1063 = vsyncpa [#allocation12], 1 }
 0x2b8   :  { %1064 = vsyncpa [#allocation4], 1 }
 0x2b9   :  { %1065 = vsyncpa [#allocation15], 1 }

</bundles_post_ra>
